<compile_context>
chip_gen: v7x
topology: tpu7x:2x2x1
jax: 0.10.0
libtpu: 0.0.40
codegen_flags: <defaults>
</compile_context>

<pallas_src>
import functools

import numpy as np
import jax
import jax.numpy as jnp
from jax.experimental import pallas as pl
from jax.experimental.pallas import tpu as pltpu

_LANE = 128
_SUBLANE = 8
_MIN_TILE = _LANE * _SUBLANE          # 1024 cells = one minimal (8,128) slab per channel
_MAX_TILE = 8 * _MIN_TILE             # 8192 cells per grid step (~0.94 MiB / f32 input block)


def _yolo_v1_loss_kernel(pred_ref, targ_ref, out_ref, *, l_coord, l_noobj):
    """One grid step: [30, rows, 128] channel-major tile -> [8, 128] partial sum."""
    f32 = lambda x: x.astype(jnp.float32)

    # ---- masks & confidences (each slice is a dense [rows, 128] slab) --------
    t_conf0 = f32(targ_ref[4])
    coord_m = t_conf0 > 0.0                        # object cells
    noobj_m = t_conf0 == 0.0                       # no-object cells (zero-padded cells land here)

    p_c0 = f32(pred_ref[4])
    p_c1 = f32(pred_ref[9])

    # ---- no-object confidence term (channels 4 and 9) ------------------------
    d4 = p_c0 - t_conf0
    d9 = p_c1 - f32(targ_ref[9])
    noobj_c = d4 * d4 + d9 * d9

    # ---- class term (channels 10..29), streamed channel-by-channel -----------
    class_c = jnp.zeros_like(t_conf0)
    for ch in range(10, 30):
        d = f32(pred_ref[ch]) - f32(targ_ref[ch])
        class_c = class_c + d * d

    # ---- box geometry ---------------------------------------------------------
    p_x0, p_y0, p_w0, p_h0 = (f32(pred_ref[ch]) for ch in range(0, 4))
    p_x1, p_y1, p_w1, p_h1 = (f32(pred_ref[ch]) for ch in range(5, 9))
    t_x0, t_y0, t_w0, t_h0 = (f32(targ_ref[ch]) for ch in range(0, 4))
    t_x1, t_y1, t_w1, t_h1 = (f32(targ_ref[ch]) for ch in range(5, 9))

    # Target slot-0 box in xyxy form (the torch loop compares both pred boxes
    # against the slot-0 target box).
    t_lx, t_ly = t_x0 - 0.5 * t_w0, t_y0 - 0.5 * t_h0
    t_rx, t_ry = t_x0 + 0.5 * t_w0, t_y0 + 0.5 * t_h0
    t_area = t_w0 * t_h0

    def iou_parts(px, py, pw, ph):
        lx, ly = px - 0.5 * pw, py - 0.5 * ph
        rx, ry = px + 0.5 * pw, py + 0.5 * ph
        iw = jnp.maximum(jnp.minimum(rx, t_rx) - jnp.maximum(lx, t_lx), 0.0)
        ih = jnp.maximum(jnp.minimum(ry, t_ry) - jnp.maximum(ly, t_ly), 0.0)
        inter = iw * ih
        return inter, pw * ph + t_area - inter      # (intersection, union)

    i0, den0 = iou_parts(p_x0, p_y0, p_w0, p_h0)
    i1, den1 = iou_parts(p_x1, p_y1, p_w1, p_h1)

    # Responsible box = argmax IoU (tie -> box 0).  Divide-free exact compare
    # (assumes positive unions; negative w/h would NaN in the torch sqrt anyway).
    resp1 = i1 * den0 > i0 * den1
    denom = jnp.where(resp1, den1, den0) + 1e-10    # eps kills 0/0 on no-object cells
    max_iou = jnp.where(resp1, i1, i0) / denom      # exact reciprocal (EUP)

    pr_x = jnp.where(resp1, p_x1, p_x0)
    pr_y = jnp.where(resp1, p_y1, p_y0)
    pr_w = jnp.where(resp1, p_w1, p_w0)
    pr_h = jnp.where(resp1, p_h1, p_h0)
    pr_c = jnp.where(resp1, p_c1, p_c0)             # responsible confidence
    pn_c = jnp.where(resp1, p_c0, p_c1)             # non-responsible confidence
    tr_x = jnp.where(resp1, t_x1, t_x0)
    tr_y = jnp.where(resp1, t_y1, t_y0)
    tr_w = jnp.where(resp1, t_w1, t_w0)
    tr_h = jnp.where(resp1, t_h1, t_h0)

    # ---- localisation / contain / not-contain ---------------------------------
    dx, dy = pr_x - tr_x, pr_y - tr_y
    # clamp keeps masked no-object lanes NaN-free; the reference assumes w,h > 0
    dw = jnp.sqrt(jnp.maximum(pr_w, 0.0)) - jnp.sqrt(jnp.maximum(tr_w, 0.0))
    dh = jnp.sqrt(jnp.maximum(pr_h, 0.0)) - jnp.sqrt(jnp.maximum(tr_h, 0.0))
    loc_c = dx * dx + dy * dy + dw * dw + dh * dh
    dcont = pr_c - max_iou

    obj_c = l_coord * loc_c + 2.0 * (dcont * dcont) + pn_c * pn_c + class_c
    contrib = (jnp.where(coord_m, obj_c, 0.0)
               + l_noobj * jnp.where(noobj_m, noobj_c, 0.0))      # [rows, 128]

    # ---- in-kernel partial reduction: plain vreg adds over (rows//8) slabs ----
    out_ref[0, :, :] = jnp.sum(contrib.reshape(-1, _SUBLANE, _LANE), axis=0)


def _choose_tile(c):
    """Cells per grid step: multiple of 1024, <= _MAX_TILE, and >=2 steps when possible."""
    c_min_pad = pl.cdiv(c, _MIN_TILE) * _MIN_TILE
    if c_min_pad <= _MIN_TILE:
        return _MIN_TILE
    half = (c_min_pad // 2) // _MIN_TILE * _MIN_TILE   # guarantees >=2 steps (v7x megacore)
    return max(_MIN_TILE, min(_MAX_TILE, half))


def yolo_v1_loss(predict, target, *, S, B, l_coord, l_noobj):
    """predict/target: [batch, S, S, 30] -> scalar loss (matches YoloV1Loss.forward)."""
    assert B == 2, "kernel specialised to B=2 (30 = 2*5 + 20 classes)"
    predict = jnp.asarray(predict)
    target = jnp.asarray(target)
    n = predict.shape[0]
    c = n * S * S

    tile = _choose_tile(c)
    c_pad = pl.cdiv(c, tile) * tile
    rows = tile // _LANE                 # sublane rows per grid step (multiple of 8)
    r_total = c_pad // _LANE
    num_tiles = c_pad // tile

    # Channel-major, sublane/lane-dense layout: [30, r_total, 128].  Padded cells
    # are all-zero on both tensors -> they land in the no-object branch with a
    # zero contribution.  allow_input_fusion lets XLA fuse this relayout into the
    # kernel's input DMAs instead of materialising an extra HBM copy.
    def relayout(x):
        x = x.reshape(c, 30).T
        x = jnp.pad(x, ((0, 0), (0, c_pad - c)))
        return x.reshape(30, r_total, _LANE)

    p = relayout(predict)
    t = relayout(target)

    kernel = functools.partial(_yolo_v1_loss_kernel,
                               l_coord=float(l_coord), l_noobj=float(l_noobj))

    partials = pl.pallas_call(
        kernel,
        out_shape=jax.ShapeDtypeStruct((num_tiles, _SUBLANE, _LANE), jnp.float32),
        grid=(num_tiles,),
        in_specs=[pl.BlockSpec((30, rows, _LANE), lambda i: (0, i, 0)),
                  pl.BlockSpec((30, rows, _LANE), lambda i: (0, i, 0))],
        out_specs=pl.BlockSpec((1, _SUBLANE, _LANE), lambda i: (i, 0, 0)),
        compiler_params=pltpu.CompilerParams(
            dimension_semantics=("parallel",),
            allow_input_fusion=[True, True]),
    )(p, t)

    # Tiny [num_tiles, 8, 128] partial-sum tensor -> scalar (trivial XLA reduce).
    return jnp.sum(partials) / n


def _yolo_loss_reference(predict, target, l_coord, l_noobj):
    """Literal numpy transcription of the PyTorch forward (loop + masked selects)."""
    predict = np.asarray(predict, np.float32)
    target = np.asarray(target, np.float32)
    N = predict.shape[0]
    conf = target[..., 4]
    coord_mask, noobj_mask = conf > 0, conf == 0

    coord_pred = predict[coord_mask].reshape(-1, 30)
    coord_target = target[coord_mask].reshape(-1, 30)
    noobj_pred = predict[noobj_mask].reshape(-1, 30)
    noobj_target = target[noobj_mask].reshape(-1, 30)

    noobj_loss = np.sum((noobj_pred[:, [4, 9]] - noobj_target[:, [4, 9]]) ** 2)
    class_loss = np.sum((coord_pred[:, 10:] - coord_target[:, 10:]) ** 2)

    box_pred = coord_pred[:, :10].reshape(-1, 5)
    box_target = coord_target[:, :10].reshape(-1, 5)

    contain = loc = not_contain = 0.0
    for i in range(0, box_target.shape[0], 2):
        b1 = box_pred[i:i + 2]
        b1x = np.concatenate([b1[:, :2] - 0.5 * b1[:, 2:4], b1[:, :2] + 0.5 * b1[:, 2:4]], 1)
        b2 = box_target[i:i + 1]
        b2x = np.concatenate([b2[:, :2] - 0.5 * b2[:, 2:4], b2[:, :2] + 0.5 * b2[:, 2:4]], 1)
        lt = np.maximum(b1x[:, None, :2], b2x[None, :, :2])
        rb = np.minimum(b1x[:, None, 2:4], b2x[None, :, 2:4])
        wh = np.clip(rb - lt, 0.0, None)
        inter = wh[..., 0] * wh[..., 1]
        a1 = ((b1x[:, 2] - b1x[:, 0]) * (b1x[:, 3] - b1x[:, 1]))[:, None]
        a2 = ((b2x[:, 2] - b2x[:, 0]) * (b2x[:, 3] - b2x[:, 1]))[None, :]
        iou = inter / (a1 + a2 - inter)
        idx = int(np.argmax(iou[:, 0]))
        miou = iou[idx, 0]
        pr, tr, pn = box_pred[i + idx], box_target[i + idx], box_pred[i + 1 - idx]
        contain += (pr[4] - miou) ** 2
        loc += np.sum((pr[:2] - tr[:2]) ** 2) + np.sum((np.sqrt(pr[2:4]) - np.sqrt(tr[2:4])) ** 2)
        not_contain += pn[4] ** 2

    return (l_coord * loc + 2.0 * contain + not_contain
            + l_noobj * noobj_loss + class_loss) / N


if __name__ == "__main__":
    S, B, l_coord, l_noobj = 7, 2, 5.0, 0.5

    key = jax.random.PRNGKey(0)
    k1, k2 = jax.random.split(key)

    # ---- case 1: tiny batch (single grid step) --------------------------------
    batch = 2
    # positive predictions so sqrt(w), sqrt(h) are well defined (as the torch code assumes)
    predict = jax.random.uniform(k1, (batch, S, S, 30), jnp.float32, 0.05, 0.95)

    target_np = np.zeros((batch, S, S, 30), np.float32)

    def set_obj(arr, b, y, x, cx, cy, w, h, cls):
        box = np.array([cx, cy, w, h, 1.0], np.float32)
        arr[b, y, x, 0:5] = box
        arr[b, y, x, 5:10] = box
        arr[b, y, x, 10:30] = 0.0
        arr[b, y, x, 10 + cls] = 1.0

    set_obj(target_np, 0, 1, 2, 0.30, 0.60, 0.20, 0.40, 3)
    set_obj(target_np, 0, 4, 5, 0.70, 0.25, 0.50, 0.15, 11)
    set_obj(target_np, 1, 0, 0, 0.55, 0.45, 0.35, 0.35, 0)
    set_obj(target_np, 1, 3, 6, 0.10, 0.90, 0.60, 0.25, 19)
    target = jnp.asarray(target_np)

    loss = yolo_v1_loss(predict, target, S=S, B=B, l_coord=l_coord, l_noobj=l_noobj)
    loss = jax.block_until_ready(loss)
    ref = _yolo_loss_reference(np.asarray(predict), target_np, l_coord, l_noobj)
    assert np.isfinite(float(loss)), float(loss)
    assert np.allclose(float(loss), ref, rtol=1e-3, atol=1e-3), (float(loss), ref)

    # ---- case 2: larger batch -> >=2 grid steps (multi-tile / megacore path) ---
    batch2 = 24
    predict2 = jax.random.uniform(k2, (batch2, S, S, 30), jnp.float32, 0.05, 0.95)
    rng = np.random.default_rng(0)
    target2_np = np.zeros((batch2, S, S, 30), np.float32)
    for b in range(batch2):
        for _ in range(3):
            y, x = (int(v) for v in rng.integers(0, S, size=2))
            set_obj(target2_np, b, y, x,
                    float(rng.uniform(0.1, 0.9)), float(rng.uniform(0.1, 0.9)),
                    float(rng.uniform(0.1, 0.6)), float(rng.uniform(0.1, 0.6)),
                    int(rng.integers(0, 20)))
    target2 = jnp.asarray(target2_np)

    loss2 = yolo_v1_loss(predict2, target2, S=S, B=B, l_coord=l_coord, l_noobj=l_noobj)
    loss2 = jax.block_until_ready(loss2)
    ref2 = _yolo_loss_reference(np.asarray(predict2), target2_np, l_coord, l_noobj)
    assert np.isfinite(float(loss2)), float(loss2)
    assert np.allclose(float(loss2), ref2, rtol=1e-3, atol=1e-3), (float(loss2), ref2)

    print("KERNEL_OK")
</pallas_src>

<mosaic_0001>
module attributes {stable_mosaic.version = 11 : i64} {
  func.func @_yolo_v1_loss_kernel(%arg0: i32, %arg1: memref<30x8x128xf32, #tpu.memory_space<vmem>>, %arg2: memref<30x8x128xf32, #tpu.memory_space<vmem>>, %arg3: memref<1x8x128xf32, #tpu.memory_space<vmem>>) attributes {dimension_semantics = [#tpu.dimension_semantics<parallel>], iteration_bounds = array<i64: 1>, scalar_prefetch = 0 : i64, scratch_operands = 0 : i64, tpu.core_type = #tpu.core_type<tc>, window_params = [{transform_indices = @transform_0, window_bounds = array<i64: 30, 8, 128>}, {transform_indices = @transform_1, window_bounds = array<i64: 30, 8, 128>}, {transform_indices = @transform_2, window_bounds = array<i64: 1, 8, 128>}]} {
    %c4 = arith.constant 4 : index
    %c0 = arith.constant 0 : index
    %c0_0 = arith.constant 0 : index
    %0 = vector.load %arg2[%c4, %c0, %c0_0] : memref<30x8x128xf32, #tpu.memory_space<vmem>>, vector<1x8x128xf32>
    %1 = vector.shape_cast %0 : vector<1x8x128xf32> to vector<8x128xf32>
    %cst = arith.constant 0.000000e+00 : f32
    %2 = vector.broadcast %cst : f32 to vector<8x128xf32>
    %3 = arith.cmpf ogt, %1, %2 : vector<8x128xf32>
    %cst_1 = arith.constant 0.000000e+00 : f32
    %4 = vector.broadcast %cst_1 : f32 to vector<8x128xf32>
    %5 = arith.cmpf oeq, %1, %4 : vector<8x128xf32>
    %c4_2 = arith.constant 4 : index
    %c0_3 = arith.constant 0 : index
    %c0_4 = arith.constant 0 : index
    %6 = vector.load %arg1[%c4_2, %c0_3, %c0_4] : memref<30x8x128xf32, #tpu.memory_space<vmem>>, vector<1x8x128xf32>
    %7 = vector.shape_cast %6 : vector<1x8x128xf32> to vector<8x128xf32>
    %c9 = arith.constant 9 : index
    %c0_5 = arith.constant 0 : index
    %c0_6 = arith.constant 0 : index
    %8 = vector.load %arg1[%c9, %c0_5, %c0_6] : memref<30x8x128xf32, #tpu.memory_space<vmem>>, vector<1x8x128xf32>
    %9 = vector.shape_cast %8 : vector<1x8x128xf32> to vector<8x128xf32>
    %10 = arith.subf %7, %1 : vector<8x128xf32>
    %c9_7 = arith.constant 9 : index
    %c0_8 = arith.constant 0 : index
    %c0_9 = arith.constant 0 : index
    %11 = vector.load %arg2[%c9_7, %c0_8, %c0_9] : memref<30x8x128xf32, #tpu.memory_space<vmem>>, vector<1x8x128xf32>
    %12 = vector.shape_cast %11 : vector<1x8x128xf32> to vector<8x128xf32>
    %13 = arith.subf %9, %12 : vector<8x128xf32>
    %14 = arith.mulf %10, %10 : vector<8x128xf32>
    %15 = arith.mulf %13, %13 : vector<8x128xf32>
    %16 = arith.addf %14, %15 : vector<8x128xf32>
    %cst_10 = arith.constant 0.000000e+00 : f32
    %17 = vector.broadcast %cst_10 : f32 to vector<8x128xf32>
    %c10 = arith.constant 10 : index
    %c0_11 = arith.constant 0 : index
    %c0_12 = arith.constant 0 : index
    %18 = vector.load %arg1[%c10, %c0_11, %c0_12] : memref<30x8x128xf32, #tpu.memory_space<vmem>>, vector<1x8x128xf32>
    %19 = vector.shape_cast %18 : vector<1x8x128xf32> to vector<8x128xf32>
    %c10_13 = arith.constant 10 : index
    %c0_14 = arith.constant 0 : index
    %c0_15 = arith.constant 0 : index
    %20 = vector.load %arg2[%c10_13, %c0_14, %c0_15] : memref<30x8x128xf32, #tpu.memory_space<vmem>>, vector<1x8x128xf32>
    %21 = vector.shape_cast %20 : vector<1x8x128xf32> to vector<8x128xf32>
    %22 = arith.subf %19, %21 : vector<8x128xf32>
    %23 = arith.mulf %22, %22 : vector<8x128xf32>
    %24 = arith.addf %17, %23 : vector<8x128xf32>
    %c11 = arith.constant 11 : index
    %c0_16 = arith.constant 0 : index
    %c0_17 = arith.constant 0 : index
    %25 = vector.load %arg1[%c11, %c0_16, %c0_17] : memref<30x8x128xf32, #tpu.memory_space<vmem>>, vector<1x8x128xf32>
    %26 = vector.shape_cast %25 : vector<1x8x128xf32> to vector<8x128xf32>
    %c11_18 = arith.constant 11 : index
    %c0_19 = arith.constant 0 : index
    %c0_20 = arith.constant 0 : index
    %27 = vector.load %arg2[%c11_18, %c0_19, %c0_20] : memref<30x8x128xf32, #tpu.memory_space<vmem>>, vector<1x8x128xf32>
    %28 = vector.shape_cast %27 : vector<1x8x128xf32> to vector<8x128xf32>
    %29 = arith.subf %26, %28 : vector<8x128xf32>
    %30 = arith.mulf %29, %29 : vector<8x128xf32>
    %31 = arith.addf %24, %30 : vector<8x128xf32>
    %c12 = arith.constant 12 : index
    %c0_21 = arith.constant 0 : index
    %c0_22 = arith.constant 0 : index
    %32 = vector.load %arg1[%c12, %c0_21, %c0_22] : memref<30x8x128xf32, #tpu.memory_space<vmem>>, vector<1x8x128xf32>
    %33 = vector.shape_cast %32 : vector<1x8x128xf32> to vector<8x128xf32>
    %c12_23 = arith.constant 12 : index
    %c0_24 = arith.constant 0 : index
    %c0_25 = arith.constant 0 : index
    %34 = vector.load %arg2[%c12_23, %c0_24, %c0_25] : memref<30x8x128xf32, #tpu.memory_space<vmem>>, vector<1x8x128xf32>
    %35 = vector.shape_cast %34 : vector<1x8x128xf32> to vector<8x128xf32>
    %36 = arith.subf %33, %35 : vector<8x128xf32>
    %37 = arith.mulf %36, %36 : vector<8x128xf32>
    %38 = arith.addf %31, %37 : vector<8x128xf32>
    %c13 = arith.constant 13 : index
    %c0_26 = arith.constant 0 : index
    %c0_27 = arith.constant 0 : index
    %39 = vector.load %arg1[%c13, %c0_26, %c0_27] : memref<30x8x128xf32, #tpu.memory_space<vmem>>, vector<1x8x128xf32>
    %40 = vector.shape_cast %39 : vector<1x8x128xf32> to vector<8x128xf32>
    %c13_28 = arith.constant 13 : index
    %c0_29 = arith.constant 0 : index
    %c0_30 = arith.constant 0 : index
    %41 = vector.load %arg2[%c13_28, %c0_29, %c0_30] : memref<30x8x128xf32, #tpu.memory_space<vmem>>, vector<1x8x128xf32>
    %42 = vector.shape_cast %41 : vector<1x8x128xf32> to vector<8x128xf32>
    %43 = arith.subf %40, %42 : vector<8x128xf32>
    %44 = arith.mulf %43, %43 : vector<8x128xf32>
    %45 = arith.addf %38, %44 : vector<8x128xf32>
    %c14 = arith.constant 14 : index
    %c0_31 = arith.constant 0 : index
    %c0_32 = arith.constant 0 : index
    %46 = vector.load %arg1[%c14, %c0_31, %c0_32] : memref<30x8x128xf32, #tpu.memory_space<vmem>>, vector<1x8x128xf32>
    %47 = vector.shape_cast %46 : vector<1x8x128xf32> to vector<8x128xf32>
    %c14_33 = arith.constant 14 : index
    %c0_34 = arith.constant 0 : index
    %c0_35 = arith.constant 0 : index
    %48 = vector.load %arg2[%c14_33, %c0_34, %c0_35] : memref<30x8x128xf32, #tpu.memory_space<vmem>>, vector<1x8x128xf32>
    %49 = vector.shape_cast %48 : vector<1x8x128xf32> to vector<8x128xf32>
    %50 = arith.subf %47, %49 : vector<8x128xf32>
    %51 = arith.mulf %50, %50 : vector<8x128xf32>
    %52 = arith.addf %45, %51 : vector<8x128xf32>
    %c15 = arith.constant 15 : index
    %c0_36 = arith.constant 0 : index
    %c0_37 = arith.constant 0 : index
    %53 = vector.load %arg1[%c15, %c0_36, %c0_37] : memref<30x8x128xf32, #tpu.memory_space<vmem>>, vector<1x8x128xf32>
    %54 = vector.shape_cast %53 : vector<1x8x128xf32> to vector<8x128xf32>
    %c15_38 = arith.constant 15 : index
    %c0_39 = arith.constant 0 : index
    %c0_40 = arith.constant 0 : index
    %55 = vector.load %arg2[%c15_38, %c0_39, %c0_40] : memref<30x8x128xf32, #tpu.memory_space<vmem>>, vector<1x8x128xf32>
    %56 = vector.shape_cast %55 : vector<1x8x128xf32> to vector<8x128xf32>
    %57 = arith.subf %54, %56 : vector<8x128xf32>
    %58 = arith.mulf %57, %57 : vector<8x128xf32>
    %59 = arith.addf %52, %58 : vector<8x128xf32>
    %c16 = arith.constant 16 : index
    %c0_41 = arith.constant 0 : index
    %c0_42 = arith.constant 0 : index
    %60 = vector.load %arg1[%c16, %c0_41, %c0_42] : memref<30x8x128xf32, #tpu.memory_space<vmem>>, vector<1x8x128xf32>
    %61 = vector.shape_cast %60 : vector<1x8x128xf32> to vector<8x128xf32>
    %c16_43 = arith.constant 16 : index
    %c0_44 = arith.constant 0 : index
    %c0_45 = arith.constant 0 : index
    %62 = vector.load %arg2[%c16_43, %c0_44, %c0_45] : memref<30x8x128xf32, #tpu.memory_space<vmem>>, vector<1x8x128xf32>
    %63 = vector.shape_cast %62 : vector<1x8x128xf32> to vector<8x128xf32>
    %64 = arith.subf %61, %63 : vector<8x128xf32>
    %65 = arith.mulf %64, %64 : vector<8x128xf32>
    %66 = arith.addf %59, %65 : vector<8x128xf32>
    %c17 = arith.constant 17 : index
    %c0_46 = arith.constant 0 : index
    %c0_47 = arith.constant 0 : index
    %67 = vector.load %arg1[%c17, %c0_46, %c0_47] : memref<30x8x128xf32, #tpu.memory_space<vmem>>, vector<1x8x128xf32>
    %68 = vector.shape_cast %67 : vector<1x8x128xf32> to vector<8x128xf32>
    %c17_48 = arith.constant 17 : index
    %c0_49 = arith.constant 0 : index
    %c0_50 = arith.constant 0 : index
    %69 = vector.load %arg2[%c17_48, %c0_49, %c0_50] : memref<30x8x128xf32, #tpu.memory_space<vmem>>, vector<1x8x128xf32>
    %70 = vector.shape_cast %69 : vector<1x8x128xf32> to vector<8x128xf32>
    %71 = arith.subf %68, %70 : vector<8x128xf32>
    %72 = arith.mulf %71, %71 : vector<8x128xf32>
    %73 = arith.addf %66, %72 : vector<8x128xf32>
    %c18 = arith.constant 18 : index
    %c0_51 = arith.constant 0 : index
    %c0_52 = arith.constant 0 : index
    %74 = vector.load %arg1[%c18, %c0_51, %c0_52] : memref<30x8x128xf32, #tpu.memory_space<vmem>>, vector<1x8x128xf32>
    %75 = vector.shape_cast %74 : vector<1x8x128xf32> to vector<8x128xf32>
    %c18_53 = arith.constant 18 : index
    %c0_54 = arith.constant 0 : index
    %c0_55 = arith.constant 0 : index
    %76 = vector.load %arg2[%c18_53, %c0_54, %c0_55] : memref<30x8x128xf32, #tpu.memory_space<vmem>>, vector<1x8x128xf32>
    %77 = vector.shape_cast %76 : vector<1x8x128xf32> to vector<8x128xf32>
    %78 = arith.subf %75, %77 : vector<8x128xf32>
    %79 = arith.mulf %78, %78 : vector<8x128xf32>
    %80 = arith.addf %73, %79 : vector<8x128xf32>
    %c19 = arith.constant 19 : index
    %c0_56 = arith.constant 0 : index
    %c0_57 = arith.constant 0 : index
    %81 = vector.load %arg1[%c19, %c0_56, %c0_57] : memref<30x8x128xf32, #tpu.memory_space<vmem>>, vector<1x8x128xf32>
    %82 = vector.shape_cast %81 : vector<1x8x128xf32> to vector<8x128xf32>
    %c19_58 = arith.constant 19 : index
    %c0_59 = arith.constant 0 : index
    %c0_60 = arith.constant 0 : index
    %83 = vector.load %arg2[%c19_58, %c0_59, %c0_60] : memref<30x8x128xf32, #tpu.memory_space<vmem>>, vector<1x8x128xf32>
    %84 = vector.shape_cast %83 : vector<1x8x128xf32> to vector<8x128xf32>
    %85 = arith.subf %82, %84 : vector<8x128xf32>
    %86 = arith.mulf %85, %85 : vector<8x128xf32>
    %87 = arith.addf %80, %86 : vector<8x128xf32>
    %c20 = arith.constant 20 : index
    %c0_61 = arith.constant 0 : index
    %c0_62 = arith.constant 0 : index
    %88 = vector.load %arg1[%c20, %c0_61, %c0_62] : memref<30x8x128xf32, #tpu.memory_space<vmem>>, vector<1x8x128xf32>
    %89 = vector.shape_cast %88 : vector<1x8x128xf32> to vector<8x128xf32>
    %c20_63 = arith.constant 20 : index
    %c0_64 = arith.constant 0 : index
    %c0_65 = arith.constant 0 : index
    %90 = vector.load %arg2[%c20_63, %c0_64, %c0_65] : memref<30x8x128xf32, #tpu.memory_space<vmem>>, vector<1x8x128xf32>
    %91 = vector.shape_cast %90 : vector<1x8x128xf32> to vector<8x128xf32>
    %92 = arith.subf %89, %91 : vector<8x128xf32>
    %93 = arith.mulf %92, %92 : vector<8x128xf32>
    %94 = arith.addf %87, %93 : vector<8x128xf32>
    %c21 = arith.constant 21 : index
    %c0_66 = arith.constant 0 : index
    %c0_67 = arith.constant 0 : index
    %95 = vector.load %arg1[%c21, %c0_66, %c0_67] : memref<30x8x128xf32, #tpu.memory_space<vmem>>, vector<1x8x128xf32>
    %96 = vector.shape_cast %95 : vector<1x8x128xf32> to vector<8x128xf32>
    %c21_68 = arith.constant 21 : index
    %c0_69 = arith.constant 0 : index
    %c0_70 = arith.constant 0 : index
    %97 = vector.load %arg2[%c21_68, %c0_69, %c0_70] : memref<30x8x128xf32, #tpu.memory_space<vmem>>, vector<1x8x128xf32>
    %98 = vector.shape_cast %97 : vector<1x8x128xf32> to vector<8x128xf32>
    %99 = arith.subf %96, %98 : vector<8x128xf32>
    %100 = arith.mulf %99, %99 : vector<8x128xf32>
    %101 = arith.addf %94, %100 : vector<8x128xf32>
    %c22 = arith.constant 22 : index
    %c0_71 = arith.constant 0 : index
    %c0_72 = arith.constant 0 : index
    %102 = vector.load %arg1[%c22, %c0_71, %c0_72] : memref<30x8x128xf32, #tpu.memory_space<vmem>>, vector<1x8x128xf32>
    %103 = vector.shape_cast %102 : vector<1x8x128xf32> to vector<8x128xf32>
    %c22_73 = arith.constant 22 : index
    %c0_74 = arith.constant 0 : index
    %c0_75 = arith.constant 0 : index
    %104 = vector.load %arg2[%c22_73, %c0_74, %c0_75] : memref<30x8x128xf32, #tpu.memory_space<vmem>>, vector<1x8x128xf32>
    %105 = vector.shape_cast %104 : vector<1x8x128xf32> to vector<8x128xf32>
    %106 = arith.subf %103, %105 : vector<8x128xf32>
    %107 = arith.mulf %106, %106 : vector<8x128xf32>
    %108 = arith.addf %101, %107 : vector<8x128xf32>
    %c23 = arith.constant 23 : index
    %c0_76 = arith.constant 0 : index
    %c0_77 = arith.constant 0 : index
    %109 = vector.load %arg1[%c23, %c0_76, %c0_77] : memref<30x8x128xf32, #tpu.memory_space<vmem>>, vector<1x8x128xf32>
    %110 = vector.shape_cast %109 : vector<1x8x128xf32> to vector<8x128xf32>
    %c23_78 = arith.constant 23 : index
    %c0_79 = arith.constant 0 : index
    %c0_80 = arith.constant 0 : index
    %111 = vector.load %arg2[%c23_78, %c0_79, %c0_80] : memref<30x8x128xf32, #tpu.memory_space<vmem>>, vector<1x8x128xf32>
    %112 = vector.shape_cast %111 : vector<1x8x128xf32> to vector<8x128xf32>
    %113 = arith.subf %110, %112 : vector<8x128xf32>
    %114 = arith.mulf %113, %113 : vector<8x128xf32>
    %115 = arith.addf %108, %114 : vector<8x128xf32>
    %c24 = arith.constant 24 : index
    %c0_81 = arith.constant 0 : index
    %c0_82 = arith.constant 0 : index
    %116 = vector.load %arg1[%c24, %c0_81, %c0_82] : memref<30x8x128xf32, #tpu.memory_space<vmem>>, vector<1x8x128xf32>
    %117 = vector.shape_cast %116 : vector<1x8x128xf32> to vector<8x128xf32>
    %c24_83 = arith.constant 24 : index
    %c0_84 = arith.constant 0 : index
    %c0_85 = arith.constant 0 : index
    %118 = vector.load %arg2[%c24_83, %c0_84, %c0_85] : memref<30x8x128xf32, #tpu.memory_space<vmem>>, vector<1x8x128xf32>
    %119 = vector.shape_cast %118 : vector<1x8x128xf32> to vector<8x128xf32>
    %120 = arith.subf %117, %119 : vector<8x128xf32>
    %121 = arith.mulf %120, %120 : vector<8x128xf32>
    %122 = arith.addf %115, %121 : vector<8x128xf32>
    %c25 = arith.constant 25 : index
    %c0_86 = arith.constant 0 : index
    %c0_87 = arith.constant 0 : index
    %123 = vector.load %arg1[%c25, %c0_86, %c0_87] : memref<30x8x128xf32, #tpu.memory_space<vmem>>, vector<1x8x128xf32>
    %124 = vector.shape_cast %123 : vector<1x8x128xf32> to vector<8x128xf32>
    %c25_88 = arith.constant 25 : index
    %c0_89 = arith.constant 0 : index
    %c0_90 = arith.constant 0 : index
    %125 = vector.load %arg2[%c25_88, %c0_89, %c0_90] : memref<30x8x128xf32, #tpu.memory_space<vmem>>, vector<1x8x128xf32>
    %126 = vector.shape_cast %125 : vector<1x8x128xf32> to vector<8x128xf32>
    %127 = arith.subf %124, %126 : vector<8x128xf32>
    %128 = arith.mulf %127, %127 : vector<8x128xf32>
    %129 = arith.addf %122, %128 : vector<8x128xf32>
    %c26 = arith.constant 26 : index
    %c0_91 = arith.constant 0 : index
    %c0_92 = arith.constant 0 : index
    %130 = vector.load %arg1[%c26, %c0_91, %c0_92] : memref<30x8x128xf32, #tpu.memory_space<vmem>>, vector<1x8x128xf32>
    %131 = vector.shape_cast %130 : vector<1x8x128xf32> to vector<8x128xf32>
    %c26_93 = arith.constant 26 : index
    %c0_94 = arith.constant 0 : index
    %c0_95 = arith.constant 0 : index
    %132 = vector.load %arg2[%c26_93, %c0_94, %c0_95] : memref<30x8x128xf32, #tpu.memory_space<vmem>>, vector<1x8x128xf32>
    %133 = vector.shape_cast %132 : vector<1x8x128xf32> to vector<8x128xf32>
    %134 = arith.subf %131, %133 : vector<8x128xf32>
    %135 = arith.mulf %134, %134 : vector<8x128xf32>
    %136 = arith.addf %129, %135 : vector<8x128xf32>
    %c27 = arith.constant 27 : index
    %c0_96 = arith.constant 0 : index
    %c0_97 = arith.constant 0 : index
    %137 = vector.load %arg1[%c27, %c0_96, %c0_97] : memref<30x8x128xf32, #tpu.memory_space<vmem>>, vector<1x8x128xf32>
    %138 = vector.shape_cast %137 : vector<1x8x128xf32> to vector<8x128xf32>
    %c27_98 = arith.constant 27 : index
    %c0_99 = arith.constant 0 : index
    %c0_100 = arith.constant 0 : index
    %139 = vector.load %arg2[%c27_98, %c0_99, %c0_100] : memref<30x8x128xf32, #tpu.memory_space<vmem>>, vector<1x8x128xf32>
    %140 = vector.shape_cast %139 : vector<1x8x128xf32> to vector<8x128xf32>
    %141 = arith.subf %138, %140 : vector<8x128xf32>
    %142 = arith.mulf %141, %141 : vector<8x128xf32>
    %143 = arith.addf %136, %142 : vector<8x128xf32>
    %c28 = arith.constant 28 : index
    %c0_101 = arith.constant 0 : index
    %c0_102 = arith.constant 0 : index
    %144 = vector.load %arg1[%c28, %c0_101, %c0_102] : memref<30x8x128xf32, #tpu.memory_space<vmem>>, vector<1x8x128xf32>
    %145 = vector.shape_cast %144 : vector<1x8x128xf32> to vector<8x128xf32>
    %c28_103 = arith.constant 28 : index
    %c0_104 = arith.constant 0 : index
    %c0_105 = arith.constant 0 : index
    %146 = vector.load %arg2[%c28_103, %c0_104, %c0_105] : memref<30x8x128xf32, #tpu.memory_space<vmem>>, vector<1x8x128xf32>
    %147 = vector.shape_cast %146 : vector<1x8x128xf32> to vector<8x128xf32>
    %148 = arith.subf %145, %147 : vector<8x128xf32>
    %149 = arith.mulf %148, %148 : vector<8x128xf32>
    %150 = arith.addf %143, %149 : vector<8x128xf32>
    %c29 = arith.constant 29 : index
    %c0_106 = arith.constant 0 : index
    %c0_107 = arith.constant 0 : index
    %151 = vector.load %arg1[%c29, %c0_106, %c0_107] : memref<30x8x128xf32, #tpu.memory_space<vmem>>, vector<1x8x128xf32>
    %152 = vector.shape_cast %151 : vector<1x8x128xf32> to vector<8x128xf32>
    %c29_108 = arith.constant 29 : index
    %c0_109 = arith.constant 0 : index
    %c0_110 = arith.constant 0 : index
    %153 = vector.load %arg2[%c29_108, %c0_109, %c0_110] : memref<30x8x128xf32, #tpu.memory_space<vmem>>, vector<1x8x128xf32>
    %154 = vector.shape_cast %153 : vector<1x8x128xf32> to vector<8x128xf32>
    %155 = arith.subf %152, %154 : vector<8x128xf32>
    %156 = arith.mulf %155, %155 : vector<8x128xf32>
    %157 = arith.addf %150, %156 : vector<8x128xf32>
    %c0_111 = arith.constant 0 : index
    %c0_112 = arith.constant 0 : index
    %c0_113 = arith.constant 0 : index
    %158 = vector.load %arg1[%c0_111, %c0_112, %c0_113] : memref<30x8x128xf32, #tpu.memory_space<vmem>>, vector<1x8x128xf32>
    %159 = vector.shape_cast %158 : vector<1x8x128xf32> to vector<8x128xf32>
    %c1 = arith.constant 1 : index
    %c0_114 = arith.constant 0 : index
    %c0_115 = arith.constant 0 : index
    %160 = vector.load %arg1[%c1, %c0_114, %c0_115] : memref<30x8x128xf32, #tpu.memory_space<vmem>>, vector<1x8x128xf32>
    %161 = vector.shape_cast %160 : vector<1x8x128xf32> to vector<8x128xf32>
    %c2 = arith.constant 2 : index
    %c0_116 = arith.constant 0 : index
    %c0_117 = arith.constant 0 : index
    %162 = vector.load %arg1[%c2, %c0_116, %c0_117] : memref<30x8x128xf32, #tpu.memory_space<vmem>>, vector<1x8x128xf32>
    %163 = vector.shape_cast %162 : vector<1x8x128xf32> to vector<8x128xf32>
    %c3 = arith.constant 3 : index
    %c0_118 = arith.constant 0 : index
    %c0_119 = arith.constant 0 : index
    %164 = vector.load %arg1[%c3, %c0_118, %c0_119] : memref<30x8x128xf32, #tpu.memory_space<vmem>>, vector<1x8x128xf32>
    %165 = vector.shape_cast %164 : vector<1x8x128xf32> to vector<8x128xf32>
    %c5 = arith.constant 5 : index
    %c0_120 = arith.constant 0 : index
    %c0_121 = arith.constant 0 : index
    %166 = vector.load %arg1[%c5, %c0_120, %c0_121] : memref<30x8x128xf32, #tpu.memory_space<vmem>>, vector<1x8x128xf32>
    %167 = vector.shape_cast %166 : vector<1x8x128xf32> to vector<8x128xf32>
    %c6 = arith.constant 6 : index
    %c0_122 = arith.constant 0 : index
    %c0_123 = arith.constant 0 : index
    %168 = vector.load %arg1[%c6, %c0_122, %c0_123] : memref<30x8x128xf32, #tpu.memory_space<vmem>>, vector<1x8x128xf32>
    %169 = vector.shape_cast %168 : vector<1x8x128xf32> to vector<8x128xf32>
    %c7 = arith.constant 7 : index
    %c0_124 = arith.constant 0 : index
    %c0_125 = arith.constant 0 : index
    %170 = vector.load %arg1[%c7, %c0_124, %c0_125] : memref<30x8x128xf32, #tpu.memory_space<vmem>>, vector<1x8x128xf32>
    %171 = vector.shape_cast %170 : vector<1x8x128xf32> to vector<8x128xf32>
    %c8 = arith.constant 8 : index
    %c0_126 = arith.constant 0 : index
    %c0_127 = arith.constant 0 : index
    %172 = vector.load %arg1[%c8, %c0_126, %c0_127] : memref<30x8x128xf32, #tpu.memory_space<vmem>>, vector<1x8x128xf32>
    %173 = vector.shape_cast %172 : vector<1x8x128xf32> to vector<8x128xf32>
    %c0_128 = arith.constant 0 : index
    %c0_129 = arith.constant 0 : index
    %c0_130 = arith.constant 0 : index
    %174 = vector.load %arg2[%c0_128, %c0_129, %c0_130] : memref<30x8x128xf32, #tpu.memory_space<vmem>>, vector<1x8x128xf32>
    %175 = vector.shape_cast %174 : vector<1x8x128xf32> to vector<8x128xf32>
    %c1_131 = arith.constant 1 : index
    %c0_132 = arith.constant 0 : index
    %c0_133 = arith.constant 0 : index
    %176 = vector.load %arg2[%c1_131, %c0_132, %c0_133] : memref<30x8x128xf32, #tpu.memory_space<vmem>>, vector<1x8x128xf32>
    %177 = vector.shape_cast %176 : vector<1x8x128xf32> to vector<8x128xf32>
    %c2_134 = arith.constant 2 : index
    %c0_135 = arith.constant 0 : index
    %c0_136 = arith.constant 0 : index
    %178 = vector.load %arg2[%c2_134, %c0_135, %c0_136] : memref<30x8x128xf32, #tpu.memory_space<vmem>>, vector<1x8x128xf32>
    %179 = vector.shape_cast %178 : vector<1x8x128xf32> to vector<8x128xf32>
    %c3_137 = arith.constant 3 : index
    %c0_138 = arith.constant 0 : index
    %c0_139 = arith.constant 0 : index
    %180 = vector.load %arg2[%c3_137, %c0_138, %c0_139] : memref<30x8x128xf32, #tpu.memory_space<vmem>>, vector<1x8x128xf32>
    %181 = vector.shape_cast %180 : vector<1x8x128xf32> to vector<8x128xf32>
    %c5_140 = arith.constant 5 : index
    %c0_141 = arith.constant 0 : index
    %c0_142 = arith.constant 0 : index
    %182 = vector.load %arg2[%c5_140, %c0_141, %c0_142] : memref<30x8x128xf32, #tpu.memory_space<vmem>>, vector<1x8x128xf32>
    %183 = vector.shape_cast %182 : vector<1x8x128xf32> to vector<8x128xf32>
    %c6_143 = arith.constant 6 : index
    %c0_144 = arith.constant 0 : index
    %c0_145 = arith.constant 0 : index
    %184 = vector.load %arg2[%c6_143, %c0_144, %c0_145] : memref<30x8x128xf32, #tpu.memory_space<vmem>>, vector<1x8x128xf32>
    %185 = vector.shape_cast %184 : vector<1x8x128xf32> to vector<8x128xf32>
    %c7_146 = arith.constant 7 : index
    %c0_147 = arith.constant 0 : index
    %c0_148 = arith.constant 0 : index
    %186 = vector.load %arg2[%c7_146, %c0_147, %c0_148] : memref<30x8x128xf32, #tpu.memory_space<vmem>>, vector<1x8x128xf32>
    %187 = vector.shape_cast %186 : vector<1x8x128xf32> to vector<8x128xf32>
    %c8_149 = arith.constant 8 : index
    %c0_150 = arith.constant 0 : index
    %c0_151 = arith.constant 0 : index
    %188 = vector.load %arg2[%c8_149, %c0_150, %c0_151] : memref<30x8x128xf32, #tpu.memory_space<vmem>>, vector<1x8x128xf32>
    %189 = vector.shape_cast %188 : vector<1x8x128xf32> to vector<8x128xf32>
    %cst_152 = arith.constant 5.000000e-01 : f32
    %190 = vector.broadcast %cst_152 : f32 to vector<8x128xf32>
    %191 = arith.mulf %190, %179 : vector<8x128xf32>
    %192 = arith.subf %175, %191 : vector<8x128xf32>
    %cst_153 = arith.constant 5.000000e-01 : f32
    %193 = vector.broadcast %cst_153 : f32 to vector<8x128xf32>
    %194 = arith.mulf %193, %181 : vector<8x128xf32>
    %195 = arith.subf %177, %194 : vector<8x128xf32>
    %cst_154 = arith.constant 5.000000e-01 : f32
    %196 = vector.broadcast %cst_154 : f32 to vector<8x128xf32>
    %197 = arith.mulf %196, %179 : vector<8x128xf32>
    %198 = arith.addf %175, %197 : vector<8x128xf32>
    %cst_155 = arith.constant 5.000000e-01 : f32
    %199 = vector.broadcast %cst_155 : f32 to vector<8x128xf32>
    %200 = arith.mulf %199, %181 : vector<8x128xf32>
    %201 = arith.addf %177, %200 : vector<8x128xf32>
    %202 = arith.mulf %179, %181 : vector<8x128xf32>
    %cst_156 = arith.constant 5.000000e-01 : f32
    %203 = vector.broadcast %cst_156 : f32 to vector<8x128xf32>
    %204 = arith.mulf %203, %163 : vector<8x128xf32>
    %205 = arith.subf %159, %204 : vector<8x128xf32>
    %cst_157 = arith.constant 5.000000e-01 : f32
    %206 = vector.broadcast %cst_157 : f32 to vector<8x128xf32>
    %207 = arith.mulf %206, %165 : vector<8x128xf32>
    %208 = arith.subf %161, %207 : vector<8x128xf32>
    %cst_158 = arith.constant 5.000000e-01 : f32
    %209 = vector.broadcast %cst_158 : f32 to vector<8x128xf32>
    %210 = arith.mulf %209, %163 : vector<8x128xf32>
    %211 = arith.addf %159, %210 : vector<8x128xf32>
    %cst_159 = arith.constant 5.000000e-01 : f32
    %212 = vector.broadcast %cst_159 : f32 to vector<8x128xf32>
    %213 = arith.mulf %212, %165 : vector<8x128xf32>
    %214 = arith.addf %161, %213 : vector<8x128xf32>
    %215 = arith.minimumf %211, %198 : vector<8x128xf32>
    %216 = arith.maximumf %205, %192 : vector<8x128xf32>
    %217 = arith.subf %215, %216 : vector<8x128xf32>
    %cst_160 = arith.constant 0.000000e+00 : f32
    %218 = vector.broadcast %cst_160 : f32 to vector<8x128xf32>
    %219 = arith.maximumf %217, %218 : vector<8x128xf32>
    %220 = arith.minimumf %214, %201 : vector<8x128xf32>
    %221 = arith.maximumf %208, %195 : vector<8x128xf32>
    %222 = arith.subf %220, %221 : vector<8x128xf32>
    %cst_161 = arith.constant 0.000000e+00 : f32
    %223 = vector.broadcast %cst_161 : f32 to vector<8x128xf32>
    %224 = arith.maximumf %222, %223 : vector<8x128xf32>
    %225 = arith.mulf %219, %224 : vector<8x128xf32>
    %226 = arith.mulf %163, %165 : vector<8x128xf32>
    %227 = arith.addf %226, %202 : vector<8x128xf32>
    %228 = arith.subf %227, %225 : vector<8x128xf32>
    %cst_162 = arith.constant 5.000000e-01 : f32
    %229 = vector.broadcast %cst_162 : f32 to vector<8x128xf32>
    %230 = arith.mulf %229, %171 : vector<8x128xf32>
    %231 = arith.subf %167, %230 : vector<8x128xf32>
    %cst_163 = arith.constant 5.000000e-01 : f32
    %232 = vector.broadcast %cst_163 : f32 to vector<8x128xf32>
    %233 = arith.mulf %232, %173 : vector<8x128xf32>
    %234 = arith.subf %169, %233 : vector<8x128xf32>
    %cst_164 = arith.constant 5.000000e-01 : f32
    %235 = vector.broadcast %cst_164 : f32 to vector<8x128xf32>
    %236 = arith.mulf %235, %171 : vector<8x128xf32>
    %237 = arith.addf %167, %236 : vector<8x128xf32>
    %cst_165 = arith.constant 5.000000e-01 : f32
    %238 = vector.broadcast %cst_165 : f32 to vector<8x128xf32>
    %239 = arith.mulf %238, %173 : vector<8x128xf32>
    %240 = arith.addf %169, %239 : vector<8x128xf32>
    %241 = arith.minimumf %237, %198 : vector<8x128xf32>
    %242 = arith.maximumf %231, %192 : vector<8x128xf32>
    %243 = arith.subf %241, %242 : vector<8x128xf32>
    %cst_166 = arith.constant 0.000000e+00 : f32
    %244 = vector.broadcast %cst_166 : f32 to vector<8x128xf32>
    %245 = arith.maximumf %243, %244 : vector<8x128xf32>
    %246 = arith.minimumf %240, %201 : vector<8x128xf32>
    %247 = arith.maximumf %234, %195 : vector<8x128xf32>
    %248 = arith.subf %246, %247 : vector<8x128xf32>
    %cst_167 = arith.constant 0.000000e+00 : f32
    %249 = vector.broadcast %cst_167 : f32 to vector<8x128xf32>
    %250 = arith.maximumf %248, %249 : vector<8x128xf32>
    %251 = arith.mulf %245, %250 : vector<8x128xf32>
    %252 = arith.mulf %171, %173 : vector<8x128xf32>
    %253 = arith.addf %252, %202 : vector<8x128xf32>
    %254 = arith.subf %253, %251 : vector<8x128xf32>
    %255 = arith.mulf %251, %228 : vector<8x128xf32>
    %256 = arith.mulf %225, %254 : vector<8x128xf32>
    %257 = arith.cmpf ogt, %255, %256 : vector<8x128xf32>
    %258 = arith.select %257, %254, %228 : vector<8x128xi1>, vector<8x128xf32>
    %cst_168 = arith.constant 1.000000e-10 : f32
    %259 = vector.broadcast %cst_168 : f32 to vector<8x128xf32>
    %260 = arith.addf %258, %259 : vector<8x128xf32>
    %261 = arith.select %257, %251, %225 : vector<8x128xi1>, vector<8x128xf32>
    %262 = arith.divf %261, %260 : vector<8x128xf32>
    %263 = arith.select %257, %167, %159 : vector<8x128xi1>, vector<8x128xf32>
    %264 = arith.select %257, %169, %161 : vector<8x128xi1>, vector<8x128xf32>
    %265 = arith.select %257, %171, %163 : vector<8x128xi1>, vector<8x128xf32>
    %266 = arith.select %257, %173, %165 : vector<8x128xi1>, vector<8x128xf32>
    %267 = arith.select %257, %9, %7 : vector<8x128xi1>, vector<8x128xf32>
    %268 = arith.select %257, %7, %9 : vector<8x128xi1>, vector<8x128xf32>
    %269 = arith.select %257, %183, %175 : vector<8x128xi1>, vector<8x128xf32>
    %270 = arith.select %257, %185, %177 : vector<8x128xi1>, vector<8x128xf32>
    %271 = arith.select %257, %187, %179 : vector<8x128xi1>, vector<8x128xf32>
    %272 = arith.select %257, %189, %181 : vector<8x128xi1>, vector<8x128xf32>
    %273 = arith.subf %263, %269 : vector<8x128xf32>
    %274 = arith.subf %264, %270 : vector<8x128xf32>
    %cst_169 = arith.constant 0.000000e+00 : f32
    %275 = vector.broadcast %cst_169 : f32 to vector<8x128xf32>
    %276 = arith.maximumf %265, %275 : vector<8x128xf32>
    %277 = math.sqrt %276 : vector<8x128xf32>
    %cst_170 = arith.constant 0.000000e+00 : f32
    %278 = vector.broadcast %cst_170 : f32 to vector<8x128xf32>
    %279 = arith.maximumf %271, %278 : vector<8x128xf32>
    %280 = math.sqrt %279 : vector<8x128xf32>
    %281 = arith.subf %277, %280 : vector<8x128xf32>
    %cst_171 = arith.constant 0.000000e+00 : f32
    %282 = vector.broadcast %cst_171 : f32 to vector<8x128xf32>
    %283 = arith.maximumf %266, %282 : vector<8x128xf32>
    %284 = math.sqrt %283 : vector<8x128xf32>
    %cst_172 = arith.constant 0.000000e+00 : f32
    %285 = vector.broadcast %cst_172 : f32 to vector<8x128xf32>
    %286 = arith.maximumf %272, %285 : vector<8x128xf32>
    %287 = math.sqrt %286 : vector<8x128xf32>
    %288 = arith.subf %284, %287 : vector<8x128xf32>
    %289 = arith.mulf %273, %273 : vector<8x128xf32>
    %290 = arith.mulf %274, %274 : vector<8x128xf32>
    %291 = arith.addf %289, %290 : vector<8x128xf32>
    %292 = arith.mulf %281, %281 : vector<8x128xf32>
    %293 = arith.addf %291, %292 : vector<8x128xf32>
    %294 = arith.mulf %288, %288 : vector<8x128xf32>
    %295 = arith.addf %293, %294 : vector<8x128xf32>
    %296 = arith.subf %267, %262 : vector<8x128xf32>
    %cst_173 = arith.constant 5.000000e+00 : f32
    %297 = vector.broadcast %cst_173 : f32 to vector<8x128xf32>
    %298 = arith.mulf %297, %295 : vector<8x128xf32>
    %299 = arith.mulf %296, %296 : vector<8x128xf32>
    %cst_174 = arith.constant 2.000000e+00 : f32
    %300 = vector.broadcast %cst_174 : f32 to vector<8x128xf32>
    %301 = arith.mulf %300, %299 : vector<8x128xf32>
    %302 = arith.addf %298, %301 : vector<8x128xf32>
    %303 = arith.mulf %268, %268 : vector<8x128xf32>
    %304 = arith.addf %302, %303 : vector<8x128xf32>
    %305 = arith.addf %304, %157 : vector<8x128xf32>
    %cst_175 = arith.constant 0.000000e+00 : f32
    %306 = vector.broadcast %cst_175 : f32 to vector<8x128xf32>
    %307 = arith.select %3, %305, %306 : vector<8x128xi1>, vector<8x128xf32>
    %cst_176 = arith.constant 0.000000e+00 : f32
    %308 = vector.broadcast %cst_176 : f32 to vector<8x128xf32>
    %309 = arith.select %5, %16, %308 : vector<8x128xi1>, vector<8x128xf32>
    %cst_177 = arith.constant 5.000000e-01 : f32
    %310 = vector.broadcast %cst_177 : f32 to vector<8x128xf32>
    %311 = arith.mulf %310, %309 : vector<8x128xf32>
    %312 = arith.addf %307, %311 : vector<8x128xf32>
    %313 = vector.shape_cast %312 : vector<8x128xf32> to vector<1x8x128xf32>
    %cst_178 = arith.constant dense<0.000000e+00> : vector<8x128xf32>
    %314 = vector.multi_reduction <add>, %313, %cst_178 [0] : vector<1x8x128xf32> to vector<8x128xf32>
    %c0_179 = arith.constant 0 : index
    %c0_180 = arith.constant 0 : index
    %c0_181 = arith.constant 0 : index
    %315 = vector.load %arg3[%c0_179, %c0_180, %c0_181] : memref<1x8x128xf32, #tpu.memory_space<vmem>>, vector<1x8x128xf32>
    %316 = vector.shape_cast %315 : vector<1x8x128xf32> to vector<8x128xf32>
    %317 = vector.shape_cast %314 : vector<8x128xf32> to vector<1x8x128xf32>
    tpu.vector_store %arg3[%c0_179, %c0_180, %c0_181], %317 {strides = array<i32>} : memref<1x8x128xf32, #tpu.memory_space<vmem>>, vector<1x8x128xf32>,
    return
  }
  func.func @transform_0(%arg0: i32) -> (i32, i32, i32) {
    %c0_i32 = arith.constant 0 : i32
    %c0_i32_0 = arith.constant 0 : i32
    %c0_i32_1 = arith.constant 0 : i32
    return %c0_i32, %arg0, %c0_i32_0 : i32, i32, i32
  }
  func.func @transform_1(%arg0: i32) -> (i32, i32, i32) {
    %c0_i32 = arith.constant 0 : i32
    %c0_i32_0 = arith.constant 0 : i32
    %c0_i32_1 = arith.constant 0 : i32
    return %c0_i32, %arg0, %c0_i32_0 : i32, i32, i32
  }
  func.func @transform_2(%arg0: i32) -> (i32, i32, i32) {
    %c0_i32 = arith.constant 0 : i32
    %c0_i32_0 = arith.constant 0 : i32
    %c0_i32_1 = arith.constant 0 : i32
    return %arg0, %c0_i32, %c0_i32_0 : i32, i32, i32
  }
}

</mosaic_0001>

<bundles_post_ra>
// kernel: tpu_custom_call.1
= control target key start
LH: loop header
LB: loop body
LE: loop exit
PB: predicated region body
PF: predicated region fallthrough
CT: control target
= control target key end

     0   :  { %7 = vsyncpa [#allocation3], 0  ;;  %s653_s0 = inlined_call_operand.hbm [shape: f32[30,8,128], index: 0, kind: input, shape index: {}]   ;;  %s654_s1 = inlined_call_operand.hbm [shape: f32[30,8,128], index: 1, kind: input, shape index: {}]   ;;  %s655_s2 = inlined_call_operand.hbm [shape: f32[1,8,128], index: 2, kind: output, shape index: {}]  }
   0x1   :  { %8 = vsyncpa [#allocation6], 0 }
   0x2   :  { %9 = vsyncpa [#allocation4], 0  ;;  %s446_s9 = smov [#allocation2]   ;;  %s374_s13 = scalar_lea.hbm %s653_s0, 3840 }
   0x3   :  { %s15_s10 = sshll.u32 %s446_s9, 4  ;;  %p375_p0 = scmp.ne.s32.totalorder %s653_s0, %s374_s13  ;;  %s16_s10 = int_to_ptr.vmem [resolvable:$true] %s15_s10 }
   0x4   :  { %p378_p1 = scmp.lt.u32.totalorder %s374_s13, %s653_s0 }
   0x6   :  { %p380_p2 = pnand %p378_p1, %p375_p0 }
   0x8   :  { %383 = shalt.err (!%p380_p2)
}
   0x9   :  { %s384_s18 = scalar_lea.vmem %s16_s10, 3840  ;;  %p389_p4 = scmp.lt.s32.totalorder %s16_s10, %s16_s10 }
   0xa   :  { %p385_p3 = scmp.ne.s32.totalorder %s16_s10, %s384_s18  ;;  %p390_p5 = scmp.lt.s32.totalorder %s384_s18, %s384_s18 }
   0xc   :  { %p391_p6 = por %p390_p5, %p389_p4 }
   0xe   :  { %p392_p7 = pnand %p391_p6, %p385_p3 }
  0x10   :  { %395 = shalt.err (!%p392_p7)
}
  0x11   :  { %s447_s19 = smov 128   ;;  %s448_s20 = smov 8  }
  0x12   :  { %21 = dma.hbm_to_vmem [thread:$0]  %s653_s0, 3840, %s16_s10, [#allocation3], %s447_s19, %s447_s19, %s448_s20  }
  0x13   :  { %s449_s23 = smov [#allocation5]   ;;  %s396_s27 = scalar_lea.hbm %s654_s1, 3840 }
  0x14   :  { %s27_s24 = sshll.u32 %s449_s23, 4  ;;  %p397_p8 = scmp.ne.s32.totalorder %s654_s1, %s396_s27  ;;  %s28_s24 = int_to_ptr.vmem [resolvable:$true] %s27_s24 }
  0x15   :  { %p400_p9 = scmp.lt.u32.totalorder %s396_s27, %s654_s1 }
  0x17   :  { %p402_p10 = pnand %p400_p9, %p397_p8 }
  0x19   :  { %405 = shalt.err (!%p402_p10)
}
  0x1a   :  { %s406_s4 = scalar_lea.vmem %s28_s24, 3840  ;;  %p411_p12 = scmp.lt.s32.totalorder %s28_s24, %s28_s24 }
  0x1b   :  { %p407_p11 = scmp.ne.s32.totalorder %s28_s24, %s406_s4  ;;  %p412_p13 = scmp.lt.s32.totalorder %s406_s4, %s406_s4 }
  0x1d   :  { %p413_p0 = por %p412_p13, %p411_p12 }
  0x1f   :  { %p414_p1 = pnand %p413_p0, %p407_p11 }
  0x21   :  { %417 = shalt.err (!%p414_p1)
}
  0x22   :  { %33 = dma.hbm_to_vmem [thread:$0]  %s654_s1, 3840, %s28_s24, [#allocation6], %s447_s19, %s447_s19, %s448_s20  }
  0x23   :  { %440 = dma.done.wait [#allocation3], 3840  }
  0x24   :  { %441 = vsyncadd [#allocation3], 4294963456 }
  0x25   :  { %442 = dma.done.wait [#allocation6], 3840  }
  0x26   :  { %443 = vsyncadd [#allocation6], 4294963456  ;;  %v56_v0 = vld [vmem:[#allocation2 + $0x50] sm:$0xff]  ;;  %v58_v1 = vld [vmem:[#allocation5 + $0x50] sm:$0xff]  ;;  %s450_s1 = smov [#allocation7]  }
  0x27   :  { %v59_v2 = vsub.f32 %v56_v0, %v58_v1  ;;  %v63_v3 = vld [vmem:[#allocation2 + $0x58] sm:$0xff]  ;;  %v65_v4 = vld [vmem:[#allocation5 + $0x58] sm:$0xff]  ;;  %v70_v5 = vld [vmem:[#allocation2 + $0x60] sm:$0xff]  ;;  %s349_s6 = sshll.u32 %s450_s1, 4  ;;  %s350_s6 = int_to_ptr.vmem [resolvable:$true] %s349_s6 }
  0x28   :  { %v66_v6 = vsub.f32 %v63_v3, %v65_v4  ;;  %v72_v7 = vld [vmem:[#allocation5 + $0x60] sm:$0xff]  ;;  %v77_v8 = vld [vmem:[#allocation2 + $0x68] sm:$0xff]  ;;  %v79_v9 = vld [vmem:[#allocation5 + $0x68] sm:$0xff]  ;;  %s418_s7 = scalar_lea.vmem %s350_s6, 128  ;;  %p423_p3 = scmp.lt.s32.totalorder %s350_s6, %s350_s6 }
  0x29   :  { %v60_v10 = vmul.f32 %v59_v2, %v59_v2  ;;  %v73_v11 = vsub.f32 %v70_v5, %v72_v7  ;;  %v80_v12 = vsub.f32 %v77_v8, %v79_v9  ;;  %v84_v13 = vld [vmem:[#allocation2 + $0x70] sm:$0xff]  ;;  %v86_v14 = vld [vmem:[#allocation5 + $0x70] sm:$0xff]  ;;  %v91_v15 = vld [vmem:[#allocation2 + $0x78] sm:$0xff]  ;;  %p419_p2 = scmp.ne.s32.totalorder %s350_s6, %s418_s7  ;;  %p424_p4 = scmp.lt.s32.totalorder %s418_s7, %s418_s7 }
  0x2a   :  { %v67_v16 = vmul.f32 %v66_v6, %v66_v6  ;;  %v87_v17 = vsub.f32 %v84_v13, %v86_v14  ;;  %v93_v18 = vld [vmem:[#allocation5 + $0x78] sm:$0xff]  ;;  %v98_v20 = vld [vmem:[#allocation2 + $0x80] sm:$0xff]  ;;  %v100_v21 = vld [vmem:[#allocation5 + $0x80] sm:$0xff] }
  0x2b   :  { %v74_v19 = vmul.f32 %v73_v11, %v73_v11  ;;  %v81_v23 = vmul.f32 %v80_v12, %v80_v12  ;;  %v94_v24 = vsub.f32 %v91_v15, %v93_v18  ;;  %v105_v25 = vld [vmem:[#allocation2 + $0x88] sm:$0xff]  ;;  %v107_v26 = vld [vmem:[#allocation5 + $0x88] sm:$0xff]  ;;  %v101_v29 = vsub.f32 %v98_v20, %v100_v21  ;;  %v112_v30 = vld [vmem:[#allocation2 + $0x90] sm:$0xff]  ;;  %p425_p5 = por %p424_p4, %p423_p3 }
  0x2c   :  { %v68_v22 = vadd.f32 %v67_v16, %v60_v10  ;;  %v88_v28 = vmul.f32 %v87_v17, %v87_v17  ;;  %v114_v31 = vld [vmem:[#allocation5 + $0x90] sm:$0xff]  ;;  %v119_v32 = vld [vmem:[#allocation2 + $0x98] sm:$0xff]  ;;  %v121_v33 = vld [vmem:[#allocation5 + $0x98] sm:$0xff]  ;;  %v108_v36 = vsub.f32 %v105_v25, %v107_v26 }
  0x2d   :  { %v95_v35 = vmul.f32 %v94_v24, %v94_v24  ;;  %v126_v37 = vld [vmem:[#allocation2 + $0xa0] sm:$0xff]  ;;  %v128_v38 = vld [vmem:[#allocation5 + $0xa0] sm:$0xff]  ;;  %v115_v39 = vsub.f32 %v112_v30, %v114_v31  ;;  %v102_v41 = vmul.f32 %v101_v29, %v101_v29  ;;  %v122_v42 = vsub.f32 %v119_v32, %v121_v33  ;;  %v133_v44 = vld [vmem:[#allocation2 + $0xa8] sm:$0xff]  ;;  %p426_p6 = pnand %p425_p5, %p419_p2 }
  0x2e   :  { %v75_v27 = vadd.f32 %v74_v19, %v68_v22  ;;  %v129_v43 = vsub.f32 %v126_v37, %v128_v38  ;;  %v135_v45 = vld [vmem:[#allocation5 + $0xa8] sm:$0xff]  ;;  %v490_v46 = vld [vmem:[#allocation2] sm:$0xff]  ;;  %v109_v48 = vmul.f32 %v108_v36, %v108_v36  ;;  %v492_v49 = vld [vmem:[#allocation2 + $0x8] sm:$0xff] }
  0x2f   :  { %v494_v50 = vld [vmem:[#allocation2 + $0x10] sm:$0xff]  ;;  %v496_v51 = vld [vmem:[#allocation2 + $0x18] sm:$0xff]  ;;  %v116_v52 = vmul.f32 %v115_v39, %v115_v39  ;;  %v123_v57 = vmul.f32 %v122_v42, %v122_v42  ;;  %v136_v58 = vsub.f32 %v133_v44, %v135_v45  ;;  %v502_v59 = vld [vmem:[#allocation2 + $0x28] sm:$0xff] }
  0x30   :  { %v82_v34 = vadd.f32 %v81_v23, %v75_v27  ;;  %v498_v53 = vld [vmem:[#allocation2 + $0x38] sm:$0xff]  ;;  %v232_v54 = vmul.f32 0.5, %v494_v50  ;;  %v234_v55 = vmul.f32 0.5, %v496_v51  ;;  %v504_v60 = vld [vmem:[#allocation2 + $0x40] sm:$0xff]  ;;  %v506_v61 = vld [vmem:[#allocation5] sm:$0xff]  ;;  %v130_v63 = vmul.f32 %v129_v43, %v129_v43 }
  0x31   :  { %v250_v62 = vmul.f32 0.5, %v498_v53  ;;  %v509_v0 = vld [vmem:[#allocation5 + $0x8] sm:$0xff]  ;;  %v511_v1 = vld [vmem:[#allocation5 + $0x10] sm:$0xff]  ;;  %v513_v2 = vld [vmem:[#allocation5 + $0x18] sm:$0xff]  ;;  %v247_v5 = vmul.f32 %v496_v51, %v494_v50  ;;  %v252_v13 = vmul.f32 0.5, %v504_v60  ;;  %v137_v38 = vmul.f32 %v136_v58, %v136_v58 }
  0x32   :  { %v89_v40 = vadd.f32 %v88_v28, %v82_v34  ;;  %v233_v3 = vsub.f32 %v490_v46, %v232_v54  ;;  %v235_v4 = vsub.f32 %v492_v49, %v234_v55  ;;  %v519_v7 = vld [vmem:[#allocation2 + $0x30] sm:$0xff]  ;;  %v225_v8 = vmul.f32 0.5, %v511_v1  ;;  %v142_v28 = vld [vmem:[#allocation5 + $0xb0] sm:$0xff] }
  0x33   :  { %v227_v9 = vmul.f32 0.5, %v513_v2  ;;  %v236_v10 = vadd.f32 %v232_v54, %v490_v46  ;;  %v237_v11 = vadd.f32 %v234_v55, %v492_v49  ;;  %v251_v12 = vsub.f32 %v502_v59, %v250_v62  ;;  %v140_v27 = vld [vmem:[#allocation2 + $0xb0] sm:$0xff] }
  0x34   :  { %v96_v47 = vadd.f32 %v95_v35, %v89_v40  ;;  %v254_v14 = vadd.f32 %v250_v62, %v502_v59  ;;  %v226_v16 = vsub.f32 %v506_v61, %v225_v8  ;;  %v229_v18 = vadd.f32 %v225_v8, %v506_v61 }
  0x35   :  { %v228_v17 = vsub.f32 %v509_v0, %v227_v9  ;;  %v230_v19 = vadd.f32 %v227_v9, %v509_v0  ;;  %v231_v20 = vmul.f32 %v513_v2, %v511_v1  ;;  %v253_v21 = vsub.f32 %v519_v7, %v252_v13 }
  0x36   :  { %v103_v56 = vadd.f32 %v102_v41, %v96_v47  ;;  %v255_v22 = vadd.f32 %v252_v13, %v519_v7  ;;  %v238_v24 = vmin.f32 %v236_v10, %v229_v18  ;;  %v239_v25 = vmax.f32 %v233_v3, %v226_v16  ;;  %v147_v47 = vld [vmem:[#allocation2 + $0xb8] sm:$0xff] }
  0x37   :  { %v243_v26 = vmax.f32 %v235_v4, %v228_v17  ;;  %v242_v29 = vmin.f32 %v237_v11, %v230_v19  ;;  %v256_v30 = vmin.f32 %v254_v14, %v229_v18  ;;  %v257_v31 = vmax.f32 %v251_v12, %v226_v16  ;;  %v154_v4 = vld [vmem:[#allocation2 + $0xc0] sm:$0xff]  ;;  %v161_v12 = vld [vmem:[#allocation2 + $0xc8] sm:$0xff]  ;;  %v163_v13 = vld [vmem:[#allocation5 + $0xc8] sm:$0xff] }
  0x38   :  { %v110_v6 = vadd.f32 %v109_v48, %v103_v56  ;;  %v260_v32 = vmin.f32 %v255_v22, %v230_v19  ;;  %v240_v33 = vsub.f32 %v238_v24, %v239_v25  ;;  %v261_v34 = vmax.f32 %v253_v21, %v228_v17  ;;  %v149_v48 = vld [vmem:[#allocation5 + $0xb8] sm:$0xff]  ;;  %v224_v16 = vld [vmem:[#allocation5 + $0x40] sm:$0xff]  ;;  %v170_v25 = vld [vmem:[#allocation5 + $0xd0] sm:$0xff] }
  0x39   :  { %v265_v35 = vmul.f32 %v504_v60, %v498_v53  ;;  %v244_v36 = vsub.f32 %v242_v29, %v243_v26  ;;  %v258_v37 = vsub.f32 %v256_v30, %v257_v31  ;;  %v143_v39 = vsub.f32 %v140_v27, %v142_v28  ;;  %v168_v24 = vld [vmem:[#allocation2 + $0xd0] sm:$0xff]  ;;  %v175_v31 = vld [vmem:[#allocation2 + $0xd8] sm:$0xff] }
  0x3a   :  { %v117_v15 = vadd.f32 %v116_v52, %v110_v6  ;;  %v241_v40 = vmax.f32 %v240_v33, 0.0  ;;  %v262_v41 = vsub.f32 %v260_v32, %v261_v34  ;;  %v248_v44 = vadd.f32 %v247_v5, %v231_v20  ;;  %v156_v6 = vld [vmem:[#allocation5 + $0xc0] sm:$0xff]  ;;  %v177_v32 = vld [vmem:[#allocation5 + $0xd8] sm:$0xff]  ;;  %v220_v33 = vld [vmem:[#allocation5 + $0x30] sm:$0xff] }
  0x3b   :  { %v245_v43 = vmax.f32 %v244_v36, 0.0  ;;  %v259_v45 = vmax.f32 %v258_v37, 0.0  ;;  %v266_v54 = vadd.f32 %v265_v35, %v231_v20  ;;  %v144_v62 = vmul.f32 %v143_v39, %v143_v39  ;;  %v50_v34 = vld [vmem:[#allocation5 + $0x48] sm:$0xff]  ;;  %v184_v39 = vld [vmem:[#allocation5 + $0xe0] sm:$0xff] }
  0x3c   :  { %v124_v23 = vadd.f32 %v123_v57, %v117_v15  ;;  %v263_v52 = vmax.f32 %v262_v41, 0.0  ;;  %v150_v3 = vsub.f32 %v147_v47, %v149_v48  ;;  %v157_v11 = vsub.f32 %v154_v4, %v156_v6  ;;  %v222_v15 = vld [vmem:[#allocation5 + $0x38] sm:$0xff] }
  0x3d   :  { %v538_v55 = vmul.f32 %v245_v43, %v241_v40  ;;  %v164_v22 = vsub.f32 %v161_v12, %v163_v13  ;;  %v171_v30 = vsub.f32 %v168_v24, %v170_v25  ;;  %v178_v37 = vsub.f32 %v175_v31, %v177_v32  ;;  %v189_v13 = vld [vmem:[#allocation2 + $0xe8] sm:$0xff] }
  0x3e   :  { %v131_v42 = vadd.f32 %v130_v63, %v124_v23  ;;  %v540_v56 = vmul.f32 %v263_v52, %v259_v45  ;;  %v151_v10 = vmul.f32 %v150_v3, %v150_v3  ;;  %v158_v21 = vmul.f32 %v157_v11, %v157_v11  ;;  %v47_v45 = vld [vmem:[#allocation2 + $0x48] sm:$0xff] }
  0x3f   :  { %v249_v58 = vsub.f32 %v248_v44, %v538_v55  ;;  %v172_v36 = vmul.f32 %v171_v30, %v171_v30  ;;  %v45_v44 = vld [vmem:[#allocation2 + $0x20] sm:$0xff]  ;;  %v51_v52 = vsub.f32 %v47_v45, %v50_v34 }
  0x40   :  { %v138_v57 = vadd.f32 %v137_v38, %v131_v42  ;;  %v267_v63 = vsub.f32 %v266_v54, %v540_v56  ;;  %v182_v38 = vld [vmem:[#allocation2 + $0xe0] sm:$0xff] }
  0x41   :  { %v268_v5 = vmul.f32 %v540_v56, %v249_v58 }
  0x42   :  { %v269_v8 = vmul.f32 %v267_v63, %v538_v55  ;;  %v145_v9 = vadd.f32 %v144_v62, %v138_v57 }
  0x44   :  { %vm546_vm0 = vcmp.gt.f32.partialorder %v268_v5, %v269_v8  ;;  %v152_v20 = vadd.f32 %v151_v10, %v145_v9 }
  0x45   :  { %v271_v17 = vsel %vm546_vm0, %v267_v63, %v249_v58  ;;  %v278_v19 = vsel %vm546_vm0, %v498_v53, %v494_v50  ;;  %v279_v23 = vsel %vm546_vm0, %v504_v60, %v496_v51  ;;  %v284_v26 = vsel %vm546_vm0, %v222_v15, %v511_v1  ;;  %v218_v1 = vld [vmem:[#allocation5 + $0x28] sm:$0xff] }
  0x46   :  { %v272_v18 = vadd.f32 1e-10, %v271_v17  ;;  %v285_v27 = vsel %vm546_vm0, %v224_v16, %v513_v2  ;;  %v566_v50 = vmax.f32 %v278_v19, 0.0  ;;  %v568_v53 = vmax.f32 %v284_v26, 0.0  ;;  %v577_v2 = vld [vmem:[#allocation5 + $0x20] sm:$0xff]  ;;  %v191_v15 = vld [vmem:[#allocation5 + $0xe8] sm:$0xff] }
  0x47   :  { %v570_v28 = vmax.f32 %v279_v23, 0.0  ;;  %v572_v29 = vmax.f32 %v285_v27, 0.0  ;;  %v159_v51 = vadd.f32 %v158_v21, %v152_v20  ;;  %v165_v60 = vmul.f32 %v164_v22, %v164_v22 }
  0x48   :  { %364 = vrcp.f32 %v272_v18  ;;  %v276_v40 = vsel %vm546_vm0, %v502_v59, %v490_v46  ;;  %v277_v41 = vsel %vm546_vm0, %v519_v7, %v492_v49  ;;  %v282_v42 = vsel %vm546_vm0, %v218_v1, %v506_v61 }
  0x49   :  { %366 = vrsqrt.f32 %v566_v50  ;;  %v166_v35 = vadd.f32 %v165_v60, %v159_v51  ;;  %v283_v43 = vsel %vm546_vm0, %v220_v33, %v509_v0  ;;  %v48_v48 = vsub.f32 %v45_v44, %v577_v2 }
  0x4a   :  { %368 = vrsqrt.f32 %v568_v53  ;;  %v185_v46 = vsub.f32 %v182_v38, %v184_v39  ;;  %v273_v49 = vsel %vm546_vm0, %v540_v56, %v538_v55  ;;  %v179_v7 = vmul.f32 %v178_v37, %v178_v37 }
  0x4b   :  { %370 = vrsqrt.f32 %v570_v28  ;;  %v173_v59 = vadd.f32 %v172_v36, %v166_v35  ;;  %v286_v54 = vsub.f32 %v276_v40, %v282_v42  ;;  %v287_v61 = vsub.f32 %v277_v41, %v283_v43 }
  0x4c   :  { %372 = vrsqrt.f32 %v572_v29  ;;  %v280_v57 = vsel %vm546_vm0, %v47_v45, %v45_v44  ;;  %vm291_vm1 = vcmp.eq.f32.partialorder %v566_v50, inf  ;;  %vm293_vm2 = vcmp.eq.f32.partialorder %v566_v50, 0.0 }
  0x4d   :  { %v294_v0 = vand.u32 2147483648, %v566_v50  ;;  %vm299_vm3 = vcmp.eq.f32.partialorder %v568_v53, inf  ;;  %vm301_vm4 = vcmp.eq.f32.partialorder %v568_v53, 0.0  ;;  %v302_v55 = vand.u32 2147483648, %v568_v53 }
  0x4e   :  { %vm308_vm5 = vcmp.eq.f32.partialorder %v570_v28, inf  ;;  %vm310_vm6 = vcmp.eq.f32.partialorder %v570_v28, 0.0  ;;  %v311_v4 = vand.u32 2147483648, %v570_v28  ;;  %vm316_vm7 = vcmp.eq.f32.partialorder %v572_v29, inf }
  0x4f   :  { %v322_v5 = vmul.f32 %v286_v54, %v286_v54  ;;  %v323_v8 = vmul.f32 %v287_v61, %v287_v61  ;;  %vm318_vm8 = vcmp.eq.f32.partialorder %v572_v29, 0.0  ;;  %v319_v12 = vand.u32 2147483648, %v572_v29 }
  0x50   :  { %v52_v20 = vmul.f32 %v48_v48, %v48_v48  ;;  %v53_v27 = vmul.f32 %v51_v52, %v51_v52  ;;  %v192_v51 = vsub.f32 %v189_v13, %v191_v15  ;;  %v180_v60 = vadd.f32 %v179_v7, %v173_v59 }
  0x51   :  { %v324_v26 = vadd.f32 %v323_v8, %v322_v5  ;;  %vm43_vm9 = vcmp.eq.f32.partialorder %v577_v2, 0.0  ;;  %vm42_vm10 = vcmp.gt.f32.partialorder %v577_v2, 0.0 }
  0x52   :  { %v365_v47 = vpop.eup %364  ;;  %v54_v34 = vadd.f32 %v53_v27, %v52_v20  ;;  %v193_v36 = vmul.f32 %v192_v51, %v192_v51 }
  0x53   :  { %v367_v62 = vpop.eup %366  ;;  %v275_v3 = vmul.f32 %v365_v47, %v273_v49 }
  0x54   :  { %v369_v56 = vpop.eup %368  ;;  %v290_v58 = vmul.f32 %v367_v62, %v566_v50  ;;  %v338_v42 = vsel %vm43_vm9, %v54_v34, 0.0 }
  0x55   :  { %v371_v6 = vpop.eup %370  ;;  %v298_v63 = vmul.f32 %v369_v56, %v568_v53  ;;  %v329_v19 = vsub.f32 %v280_v57, %v275_v3  ;;  %v339_v47 = vmul.f32 0.5, %v338_v42 }
  0x56   :  { %v373_v9 = vpop.eup %372  ;;  %v292_v10 = vsel %vm291_vm1, %v566_v50, %v290_v58  ;;  %v307_v11 = vmul.f32 %v371_v6, %v570_v28  ;;  %v186_v50 = vmul.f32 %v185_v46, %v185_v46 }
  0x57   :  { %v295_v16 = vsel %vm293_vm2, %v294_v0, %v292_v10  ;;  %v300_v17 = vsel %vm299_vm3, %v568_v53, %v298_v63  ;;  %v315_v18 = vmul.f32 %v373_v9, %v572_v29  ;;  %v331_v32 = vmul.f32 %v329_v19, %v329_v19 }
  0x58   :  { %v303_v21 = vsel %vm301_vm4, %v302_v55, %v300_v17  ;;  %v309_v22 = vsel %vm308_vm5, %v570_v28, %v307_v11  ;;  %v281_v28 = vsel %vm546_vm0, %v45_v44, %v47_v45  ;;  %v187_v35 = vadd.f32 %v186_v50, %v180_v60 }
  0x59   :  { %v304_v23 = vsub.f32 %v295_v16, %v303_v21  ;;  %v312_v24 = vsel %vm310_vm6, %v311_v4, %v309_v22  ;;  %v317_v25 = vsel %vm316_vm7, %v572_v29, %v315_v18  ;;  %v332_v38 = vmul.f32 2.0, %v331_v32 }
  0x5a   :  { %v320_v53 = vsel %vm318_vm8, %v319_v12, %v317_v25  ;;  %v334_v40 = vmul.f32 %v281_v28, %v281_v28  ;;  %v194_v29 = vadd.f32 %v193_v36, %v187_v35 }
  0x5b   :  { %v321_v30 = vsub.f32 %v312_v24, %v320_v53  ;;  %v325_v31 = vmul.f32 %v304_v23, %v304_v23 }
  0x5d   :  { %v326_v1 = vadd.f32 %v325_v31, %v324_v26  ;;  %v327_v33 = vmul.f32 %v321_v30, %v321_v30 }
  0x5f   :  { %v328_v37 = vadd.f32 %v327_v33, %v326_v1 }
  0x61   :  { %v330_v39 = vmul.f32 5.0, %v328_v37 }
  0x63   :  { %v333_v41 = vadd.f32 %v332_v38, %v330_v39 }
  0x65   :  { %v335_v43 = vadd.f32 %v334_v40, %v333_v41 }
  0x67   :  { %v336_v48 = vadd.f32 %v335_v43, %v194_v29 }
  0x69   :  { %v337_v14 = vsel %vm42_vm10, %v336_v48, 0.0 }
  0x6a   :  { %v340_v44 = vadd.f32 %v339_v47, %v337_v14 }
  0x6c   :  { %342 = vst [vmem:[#allocation7] sm:$0xff] %v340_v44 }
  0x6d   :  { %429 = shalt.err (!%p426_p6)
}
  0x6e   :  { %s430_s10 = scalar_lea.hbm %s655_s2, 128 }
  0x6f   :  { %p431_p7 = scmp.ne.s32.totalorder %s655_s2, %s430_s10  ;;  %p434_p8 = scmp.lt.u32.totalorder %s430_s10, %s655_s2 }
  0x71   :  { %p436_p9 = pnand %p434_p8, %p431_p7 }
  0x73   :  { %439 = shalt.err (!%p436_p9)
}
  0x74   :  { %352 = dma.vmem_to_hbm [thread:$0]  %s350_s6, 128, %s655_s2, [#allocation4]  }
  0x75   :  { %444 = dma.done.wait [#allocation4], 128  }
  0x76   :  { %445 = vsyncadd [#allocation4], 4294967168 }
  0x77   :  { %356 = vsyncpa [#allocation3], 1 }
  0x78   :  { %357 = vsyncpa [#allocation6], 1 }
  0x79   :  { %358 = vsyncpa [#allocation4], 1 }

</bundles_post_ra>
